<compile_context>
chip_gen: v6e
topology: v6e:2x2x1
jax: 0.10.0
libtpu: 0.0.40
codegen_flags: <defaults>
</compile_context>

<pallas_src>
import functools

import jax
import jax.numpy as jnp
from jax import lax
from jax.experimental import pallas as pl
from jax.experimental.pallas import tpu as pltpu


def _round_up(x, m):
    return ((x + m - 1) // m) * m


def _make_kernel(*, chunk, n_chunks, layer1_on_vpu):
    """Builds the fused kernel for a (batch, HW-tile) grid step."""

    def kernel(x_ref, w1_ref, b1_ref, w2_ref, b2_ref, w3_ref, b3_ref, o_ref):
        c_in = x_ref.shape[0]
        w1 = w1_ref[...]          # (C_mid, C_in)  f32  (tiny; VPU layer-1 path)
        b1 = b1_ref[...]          # (C_mid, 1)     f32
        w2 = w2_ref[...]          # (C_mid, C_mid) bf16
        b2 = b2_ref[...]          # (C_mid, 1)     f32
        w3 = w3_ref[...]          # (C_out, C_mid) bf16
        b3 = b3_ref[...]          # (C_out, 1)     f32

        def compute(xs):
            # xs: (C_in, chunk) f32 -> (C_out, chunk) f32.
            if layer1_on_vpu:
                # K = C_in is tiny (e.g. 4): VPU broadcast-MACs (outer products)
                # instead of a <2%-K-utilization MXU pass; f32 math everywhere
                # so this is also safe on v5e (no bf16 VPU).
                acc = xs[0:1, :] * w1[:, 0:1]
                for c in range(1, c_in):
                    acc = acc + xs[c:c + 1, :] * w1[:, c:c + 1]
            else:
                acc = jnp.dot(w1.astype(jnp.bfloat16), xs.astype(jnp.bfloat16),
                              preferred_element_type=jnp.float32)
            h = jnp.maximum(acc + b1, 0.0).astype(jnp.bfloat16)
            # Layers 2/3: bf16 operands on the MXU, f32 accumulation.
            h = jnp.dot(w2, h, preferred_element_type=jnp.float32) + b2
            h = jnp.maximum(h, 0.0).astype(jnp.bfloat16)
            return jnp.dot(w3, h, preferred_element_type=jnp.float32) + b3

        if n_chunks == 1:
            o_ref[...] = compute(x_ref[...]).astype(o_ref.dtype)
        else:
            # Lane-chunked inner loop keeps the (C_mid, chunk) intermediates
            # register-resident instead of round-tripping (C_mid, t) via VMEM.
            def body(j, carry):
                start = pl.multiple_of(j * chunk, chunk)
                xs = x_ref[:, pl.ds(start, chunk)]
                o_ref[:, pl.ds(start, chunk)] = compute(xs).astype(o_ref.dtype)
                return carry

            lax.fori_loop(0, n_chunks, body, 0, unroll=2)

    return kernel


@functools.partial(jax.jit, static_argnames=("tile_hw", "chunk", "layer1_on_vpu"))
def pretransfered_decoder_forward(x_nchw, params, tile_hw=32768, chunk=512,
                                  layer1_on_vpu=True):
    """x_nchw: (N, C_in, H, W) float32.  Returns (N, C_out, H, W) float32."""
    w1, b1, w2, b2, w3, b3 = params               # w: (out, in), b: (out,)
    N, C_in, H, W = x_nchw.shape
    C_mid = int(w1.shape[0])
    C_out = int(w3.shape[0])
    HW = H * W

    # NCHW -> (N, C_in, H*W): pure reshape, no data movement.
    x = x_nchw.reshape(N, C_in, HW)

    # Lane-axis tile: multiple of 128; no host-side padding — Pallas masks the
    # last partial block (input over-read is safe: no cross-lane mixing).
    t = min(_round_up(tile_hw, 128), _round_up(HW, 128))
    # v7x has 2 TensorCores; make sure the "parallel" grid has >= 2 steps.
    if N * pl.cdiv(HW, t) < 2:
        t = max(128, _round_up(pl.cdiv(HW, 2), 128))
    # Inner lane chunk (must divide t; t is always a multiple of 128).
    tc = min(_round_up(chunk, 128), t)
    while t % tc != 0:
        tc -= 128
    n_chunks = t // tc

    grid = (N, pl.cdiv(HW, t))

    # Biases as f32 (C, 1) columns; bf16 weights for the MXU layers, f32 for
    # the VPU layer-1 path.
    w1f = w1.astype(jnp.float32)
    w2b = w2.astype(jnp.bfloat16)
    w3b = w3.astype(jnp.bfloat16)
    b1c = b1.astype(jnp.float32).reshape(C_mid, 1)
    b2c = b2.astype(jnp.float32).reshape(C_mid, 1)
    b3c = b3.astype(jnp.float32).reshape(C_out, 1)

    flops = 2 * N * HW * (C_in * C_mid + C_mid * C_mid + C_mid * C_out)
    bytes_accessed = (4 * N * HW * (C_in + C_out)
                      + 4 * (w1.size + b1.size + b2.size + b3.size)
                      + 2 * (w2.size + w3.size))
    cost = pl.CostEstimate(flops=flops, transcendentals=0,
                           bytes_accessed=bytes_accessed)

    # Double-buffered x/out tiles + in-kernel intermediates, with headroom.
    vmem_need = (2 * C_in * t * 4 + 2 * C_out * t * 4
                 + 3 * C_mid * tc * 4 + (1 << 20))
    vmem_bytes = int(min(max(2 * vmem_need, 16 << 20), 32 << 20))

    kernel = _make_kernel(chunk=tc, n_chunks=n_chunks,
                          layer1_on_vpu=layer1_on_vpu)

    out = pl.pallas_call(
        kernel,
        out_shape=jax.ShapeDtypeStruct((N, C_out, HW), jnp.float32),
        grid=grid,
        in_specs=[
            pl.BlockSpec((None, C_in, t), lambda n, j: (n, 0, j)),   # x tile
            pl.BlockSpec((C_mid, C_in), lambda n, j: (0, 0)),        # W1 (f32)
            pl.BlockSpec((C_mid, 1), lambda n, j: (0, 0)),           # b1
            pl.BlockSpec((C_mid, C_mid), lambda n, j: (0, 0)),       # W2 (bf16)
            pl.BlockSpec((C_mid, 1), lambda n, j: (0, 0)),           # b2
            pl.BlockSpec((C_out, C_mid), lambda n, j: (0, 0)),       # W3 (bf16)
            pl.BlockSpec((C_out, 1), lambda n, j: (0, 0)),           # b3
        ],
        out_specs=pl.BlockSpec((None, C_out, t), lambda n, j: (n, 0, j)),
        compiler_params=pltpu.CompilerParams(
            dimension_semantics=("parallel", "parallel"),
            vmem_limit_bytes=vmem_bytes),
        cost_estimate=cost,
    )(x, w1f, b1c, w2b, b2c, w3b, b3c)

    # Restore spatial dims (pure reshape).
    return out.reshape(N, C_out, H, W)


def init_params(key, c_in, c_mid, c_out):
    """Deterministic synthetic weights in PyTorch conv-1x1 style: W (out, in), b (out,)."""
    k1, k2, k3, k4, k5, k6 = jax.random.split(key, 6)
    s1 = (2.0 / c_in) ** 0.5
    s2 = (2.0 / c_mid) ** 0.5
    w1 = jax.random.normal(k1, (c_mid, c_in), jnp.float32) * s1
    b1 = jax.random.normal(k2, (c_mid,), jnp.float32) * 0.01
    w2 = jax.random.normal(k3, (c_mid, c_mid), jnp.float32) * s2
    b2 = jax.random.normal(k4, (c_mid,), jnp.float32) * 0.01
    w3 = jax.random.normal(k5, (c_out, c_mid), jnp.float32) * s2
    b3 = jax.random.normal(k6, (c_out,), jnp.float32) * 0.01
    return (w1, b1, w2, b2, w3, b3)


def reference_forward(x_nchw, params):
    """Plain-JAX f32 reference matching PyTorch 1x1-conv semantics (NCHW)."""
    w1, b1, w2, b2, w3, b3 = params

    def conv1x1(x, w, b):
        return jnp.einsum('oc,nchw->nohw', w, x) + b[None, :, None, None]

    h = jnp.maximum(conv1x1(x_nchw, w1, b1), 0.0)
    h = jnp.maximum(conv1x1(h, w2, b2), 0.0)
    return conv1x1(h, w3, b3)


if __name__ == "__main__":
    key = jax.random.PRNGKey(0)
    kx, kp = jax.random.split(key)

    N, C_in, H, W = 2, 4, 16, 16
    C_mid, C_out = 32, 8

    params = init_params(kp, C_in, C_mid, C_out)

    # bf16 matmul operands (f32 accumulation) -> loosened tolerance vs f32 ref.
    TOL = dict(atol=5e-2, rtol=5e-2)

    # Case 1: nominal small shape (single full tile per batch element).
    x = jax.random.normal(kx, (N, C_in, H, W), jnp.float32)
    out = jax.block_until_ready(pretransfered_decoder_forward(x, params))
    ref = reference_forward(x, params)
    assert out.shape == (N, C_out, H, W), out.shape
    assert jnp.allclose(out, ref, **TOL), (
        "mismatch", float(jnp.max(jnp.abs(out - ref))))

    # Case 2: HW not a multiple of 128, N == 1 — exercises the masked partial
    # final block and the >=2-step grid split (both v7x TensorCores fed).
    x2 = jax.random.normal(jax.random.PRNGKey(1), (1, C_in, 24, 24), jnp.float32)
    out2 = jax.block_until_ready(pretransfered_decoder_forward(x2, params))
    ref2 = reference_forward(x2, params)
    assert jnp.allclose(out2, ref2, **TOL), (
        "mismatch (partial block)", float(jnp.max(jnp.abs(out2 - ref2))))

    # Case 3: larger HW — exercises the in-kernel lane-chunk fori_loop.
    x3 = jax.random.normal(jax.random.PRNGKey(2), (2, C_in, 48, 48), jnp.float32)
    out3 = jax.block_until_ready(pretransfered_decoder_forward(x3, params))
    ref3 = reference_forward(x3, params)
    assert jnp.allclose(out3, ref3, **TOL), (
        "mismatch (chunked)", float(jnp.max(jnp.abs(out3 - ref3))))

    print("KERNEL_OK")
</pallas_src>

<mosaic_0001>
module attributes {stable_mosaic.version = 11 : i64} {
  func.func @kernel(%arg0: i32, %arg1: i32, %arg2: memref<1x4x256xf32, #tpu.memory_space<vmem>>, %arg3: memref<32x4xf32, #tpu.memory_space<vmem>>, %arg4: memref<32x1xf32, #tpu.memory_space<vmem>>, %arg5: memref<32x32xbf16, #tpu.memory_space<vmem>>, %arg6: memref<32x1xf32, #tpu.memory_space<vmem>>, %arg7: memref<8x32xbf16, #tpu.memory_space<vmem>>, %arg8: memref<8x1xf32, #tpu.memory_space<vmem>>, %arg9: memref<1x8x256xf32, #tpu.memory_space<vmem>>) attributes {dimension_semantics = [#tpu.dimension_semantics<parallel>, #tpu.dimension_semantics<parallel>], iteration_bounds = array<i64: 2, 1>, scalar_prefetch = 0 : i64, scratch_operands = 0 : i64, tpu.core_type = #tpu.core_type<tc>, window_params = [{transform_indices = @transform_0, window_bounds = array<i64: 1, 4, 256>}, {pipeline_mode = #tpu.pipeline_mode<synchronous>, transform_indices = @transform_1, window_bounds = array<i64: 32, 4>}, {pipeline_mode = #tpu.pipeline_mode<synchronous>, transform_indices = @transform_2, window_bounds = array<i64: 32, 1>}, {pipeline_mode = #tpu.pipeline_mode<synchronous>, transform_indices = @transform_3, window_bounds = array<i64: 32, 32>}, {pipeline_mode = #tpu.pipeline_mode<synchronous>, transform_indices = @transform_4, window_bounds = array<i64: 32, 1>}, {pipeline_mode = #tpu.pipeline_mode<synchronous>, transform_indices = @transform_5, window_bounds = array<i64: 8, 32>}, {pipeline_mode = #tpu.pipeline_mode<synchronous>, transform_indices = @transform_6, window_bounds = array<i64: 8, 1>}, {transform_indices = @transform_7, window_bounds = array<i64: 1, 8, 256>}]} {
    %c0 = arith.constant 0 : index
    %c0_0 = arith.constant 0 : index
    %0 = vector.load %arg3[%c0, %c0_0] : memref<32x4xf32, #tpu.memory_space<vmem>>, vector<32x4xf32>
    %c0_1 = arith.constant 0 : index
    %c0_2 = arith.constant 0 : index
    %1 = vector.load %arg4[%c0_1, %c0_2] : memref<32x1xf32, #tpu.memory_space<vmem>>, vector<32x1xf32>
    %c0_3 = arith.constant 0 : index
    %c0_4 = arith.constant 0 : index
    %2 = vector.load %arg5[%c0_3, %c0_4] : memref<32x32xbf16, #tpu.memory_space<vmem>>, vector<32x32xbf16>
    %c0_5 = arith.constant 0 : index
    %c0_6 = arith.constant 0 : index
    %3 = vector.load %arg6[%c0_5, %c0_6] : memref<32x1xf32, #tpu.memory_space<vmem>>, vector<32x1xf32>
    %c0_7 = arith.constant 0 : index
    %c0_8 = arith.constant 0 : index
    %4 = vector.load %arg7[%c0_7, %c0_8] : memref<8x32xbf16, #tpu.memory_space<vmem>>, vector<8x32xbf16>
    %c0_9 = arith.constant 0 : index
    %c0_10 = arith.constant 0 : index
    %5 = vector.load %arg8[%c0_9, %c0_10] : memref<8x1xf32, #tpu.memory_space<vmem>>, vector<8x1xf32>
    %c0_11 = arith.constant 0 : index
    %c0_12 = arith.constant 0 : index
    %c0_13 = arith.constant 0 : index
    %6 = vector.load %arg2[%c0_11, %c0_12, %c0_13] : memref<1x4x256xf32, #tpu.memory_space<vmem>>, vector<1x4x256xf32>
    %7 = vector.shape_cast %6 : vector<1x4x256xf32> to vector<4x256xf32>
    %8 = vector.extract_strided_slice %7 {offsets = [0, 0], sizes = [1, 256], strides = [1, 1]} : vector<4x256xf32> to vector<1x256xf32>
    %9 = vector.extract_strided_slice %0 {offsets = [0, 0], sizes = [32, 1], strides = [1, 1]} : vector<32x4xf32> to vector<32x1xf32>
    %10 = vector.broadcast %8 : vector<1x256xf32> to vector<32x256xf32>
    %11 = vector.broadcast %9 : vector<32x1xf32> to vector<32x256xf32>
    %12 = arith.mulf %10, %11 : vector<32x256xf32>
    %13 = vector.extract_strided_slice %7 {offsets = [1, 0], sizes = [1, 256], strides = [1, 1]} : vector<4x256xf32> to vector<1x256xf32>
    %14 = vector.extract_strided_slice %0 {offsets = [0, 1], sizes = [32, 1], strides = [1, 1]} : vector<32x4xf32> to vector<32x1xf32>
    %15 = vector.broadcast %13 : vector<1x256xf32> to vector<32x256xf32>
    %16 = vector.broadcast %14 : vector<32x1xf32> to vector<32x256xf32>
    %17 = arith.mulf %15, %16 : vector<32x256xf32>
    %18 = arith.addf %12, %17 : vector<32x256xf32>
    %19 = vector.extract_strided_slice %7 {offsets = [2, 0], sizes = [1, 256], strides = [1, 1]} : vector<4x256xf32> to vector<1x256xf32>
    %20 = vector.extract_strided_slice %0 {offsets = [0, 2], sizes = [32, 1], strides = [1, 1]} : vector<32x4xf32> to vector<32x1xf32>
    %21 = vector.broadcast %19 : vector<1x256xf32> to vector<32x256xf32>
    %22 = vector.broadcast %20 : vector<32x1xf32> to vector<32x256xf32>
    %23 = arith.mulf %21, %22 : vector<32x256xf32>
    %24 = arith.addf %18, %23 : vector<32x256xf32>
    %25 = vector.extract_strided_slice %7 {offsets = [3, 0], sizes = [1, 256], strides = [1, 1]} : vector<4x256xf32> to vector<1x256xf32>
    %26 = vector.extract_strided_slice %0 {offsets = [0, 3], sizes = [32, 1], strides = [1, 1]} : vector<32x4xf32> to vector<32x1xf32>
    %27 = vector.broadcast %25 : vector<1x256xf32> to vector<32x256xf32>
    %28 = vector.broadcast %26 : vector<32x1xf32> to vector<32x256xf32>
    %29 = arith.mulf %27, %28 : vector<32x256xf32>
    %30 = arith.addf %24, %29 : vector<32x256xf32>
    %31 = vector.broadcast %1 : vector<32x1xf32> to vector<32x256xf32>
    %32 = arith.addf %30, %31 : vector<32x256xf32>
    %cst = arith.constant 0.000000e+00 : f32
    %33 = vector.broadcast %cst : f32 to vector<32x256xf32>
    %34 = arith.maximumf %32, %33 : vector<32x256xf32>
    %35 = arith.truncf %34 : vector<32x256xf32> to vector<32x256xbf16>
    %cst_14 = arith.constant dense<0.000000e+00> : vector<32x256xf32>
    %36 = tpu.matmul %2, %35, %cst_14 {dimension_numbers = #tpu.dot_dimension_numbers<[1], [0], [0], [1], [0, 0, 1, 1], [], []>} : vector<32x32xbf16>, vector<32x256xbf16>, vector<32x256xf32> -> vector<32x256xf32>
    %37 = vector.broadcast %3 : vector<32x1xf32> to vector<32x256xf32>
    %38 = arith.addf %36, %37 : vector<32x256xf32>
    %cst_15 = arith.constant 0.000000e+00 : f32
    %39 = vector.broadcast %cst_15 : f32 to vector<32x256xf32>
    %40 = arith.maximumf %38, %39 : vector<32x256xf32>
    %41 = arith.truncf %40 : vector<32x256xf32> to vector<32x256xbf16>
    %cst_16 = arith.constant dense<0.000000e+00> : vector<8x256xf32>
    %42 = tpu.matmul %4, %41, %cst_16 {dimension_numbers = #tpu.dot_dimension_numbers<[1], [0], [0], [1], [0, 0, 1, 1], [], []>} : vector<8x32xbf16>, vector<32x256xbf16>, vector<8x256xf32> -> vector<8x256xf32>
    %43 = vector.broadcast %5 : vector<8x1xf32> to vector<8x256xf32>
    %44 = arith.addf %42, %43 : vector<8x256xf32>
    %c0_17 = arith.constant 0 : index
    %c0_18 = arith.constant 0 : index
    %c0_19 = arith.constant 0 : index
    %45 = vector.load %arg9[%c0_17, %c0_18, %c0_19] : memref<1x8x256xf32, #tpu.memory_space<vmem>>, vector<1x8x256xf32>
    %46 = vector.shape_cast %45 : vector<1x8x256xf32> to vector<8x256xf32>
    %47 = vector.shape_cast %44 : vector<8x256xf32> to vector<1x8x256xf32>
    tpu.vector_store %arg9[%c0_17, %c0_18, %c0_19], %47 {strides = array<i32>} : memref<1x8x256xf32, #tpu.memory_space<vmem>>, vector<1x8x256xf32>,
    return
  }
  func.func @transform_0(%arg0: i32, %arg1: i32) -> (i32, i32, i32) {
    %c0_i32 = arith.constant 0 : i32
    %c0_i32_0 = arith.constant 0 : i32
    return %arg0, %c0_i32, %arg1 : i32, i32, i32
  }
  func.func @transform_1(%arg0: i32, %arg1: i32) -> (i32, i32) {
    %c0_i32 = arith.constant 0 : i32
    %c0_i32_0 = arith.constant 0 : i32
    %c0_i32_1 = arith.constant 0 : i32
    return %c0_i32, %c0_i32_0 : i32, i32
  }
  func.func @transform_2(%arg0: i32, %arg1: i32) -> (i32, i32) {
    %c0_i32 = arith.constant 0 : i32
    %c0_i32_0 = arith.constant 0 : i32
    %c0_i32_1 = arith.constant 0 : i32
    return %c0_i32, %c0_i32_0 : i32, i32
  }
  func.func @transform_3(%arg0: i32, %arg1: i32) -> (i32, i32) {
    %c0_i32 = arith.constant 0 : i32
    %c0_i32_0 = arith.constant 0 : i32
    %c0_i32_1 = arith.constant 0 : i32
    return %c0_i32, %c0_i32_0 : i32, i32
  }
  func.func @transform_4(%arg0: i32, %arg1: i32) -> (i32, i32) {
    %c0_i32 = arith.constant 0 : i32
    %c0_i32_0 = arith.constant 0 : i32
    %c0_i32_1 = arith.constant 0 : i32
    return %c0_i32, %c0_i32_0 : i32, i32
  }
  func.func @transform_5(%arg0: i32, %arg1: i32) -> (i32, i32) {
    %c0_i32 = arith.constant 0 : i32
    %c0_i32_0 = arith.constant 0 : i32
    %c0_i32_1 = arith.constant 0 : i32
    return %c0_i32, %c0_i32_0 : i32, i32
  }
  func.func @transform_6(%arg0: i32, %arg1: i32) -> (i32, i32) {
    %c0_i32 = arith.constant 0 : i32
    %c0_i32_0 = arith.constant 0 : i32
    %c0_i32_1 = arith.constant 0 : i32
    return %c0_i32, %c0_i32_0 : i32, i32
  }
  func.func @transform_7(%arg0: i32, %arg1: i32) -> (i32, i32, i32) {
    %c0_i32 = arith.constant 0 : i32
    %c0_i32_0 = arith.constant 0 : i32
    return %arg0, %c0_i32, %arg1 : i32, i32, i32
  }
}

</mosaic_0001>

<bundles_post_ra>
// kernel: pretransfered_decoder_forward.1
= control target key start
LH: loop header
LB: loop body
LE: loop exit
PB: predicated region body
PF: predicated region fallthrough
CT: control target
= control target key end

     0   :  { %s942_s24 = smov 0   ;;  %s944_s25 = smov 0   ;;  %s1044_s0 = inlined_call_operand.vmem [shape: f32[2,4,256], index: 0, kind: input, shape index: {}]   ;;  %s1045_s1 = inlined_call_operand.vmem [shape: f32[32,4], index: 1, kind: input, shape index: {}]   ;;  %s1046_s2 = inlined_call_operand.vmem [shape: f32[32,1], index: 2, kind: input, shape index: {}]   ;;  %s1047_s3 = inlined_call_operand.vmem [shape: bf16[32,32], index: 3, kind: input, shape index: {}]   ;;  %s1048_s4 = inlined_call_operand.vmem [shape: f32[32,1], index: 4, kind: input, shape index: {}]   ;;  %s1049_s5 = inlined_call_operand.vmem [shape: bf16[8,32], index: 5, kind: input, shape index: {}]   ;;  %s1050_s6 = inlined_call_operand.vmem [shape: f32[8,1], index: 6, kind: input, shape index: {}]   ;;  %s1051_s7 = inlined_call_operand.vmem [shape: f32[2,8,256], index: 7, kind: output, shape index: {}]  }
   0x1   :  { %s946_s26 = smov 0  }
   0x2 LB: > { %s29_s27 = sadd.s32 1, %s892_s25  ;;  %p819_p0 = scmp.ge.s32.totalorder %s896_s26, 1  ;;  %s896_s26 = sphi %s946_s26, %s17_s26   ;;  %s892_s25 = sphi %s944_s25, %s1053_s25   ;;  %s888_s24 = sphi %s942_s24, %s1052_s24  }
   0x3   : > { %p31_p1 = scmp.ge.s32.totalorder %s29_s27, 2  ;;  %p258_p2 = scmp.lt.s32.totalorder %s896_s26, 3 }
   0x5   : > { %s1055_s27 = smov (%p31_p1, %s29_s27), 0  ;;  %p259_p3 = pnand %p819_p0, %p258_p2 }
   0x6   : > { %p299_p4 = scmp.lt.s32.totalorder (!%p259_p3), %s888_s24, 1 }
   0x7   : > { %262 = sbr.rel (%p259_p3) target bundleno = 619 (0x26b), region = 48 }
   0xc   : > { %v321_v0 = vld [vmem:[%s1045_s1 + $0x10] sm:$0xff]  ;;  %v898_v1 = vmov 3   ;;  %v899_v2 = vmov 1   ;;  %v322_v3 = vld [vmem:[%s1045_s1 + $0x18] sm:$0xff]  ;;  %v900_v4 = vmov 0   ;;  %v901_v5 = vmov 2  }
   0xd   : > { %865 = vset.pattern.permute.xlu0 %v898_v1  ;;  %861 = vset.pattern.permute.xlu1 %v899_v2  ;;  %v320_v6 = vld [vmem:[%s1045_s1 + $0x8] sm:$0xff]  ;;  %v319_v7 = vld [vmem:[%s1045_s1] sm:$0xff]  ;;  %v325_v8 = vld [vmem:[%s1046_s2 + $0x10] sm:$0xff]  ;;  %s1057_s24 = smov (!%p299_p4, %s888_s24), 1  ;;  %v339_v22 = vlaneseq  ;;  %vm605_vm0 = vcmask 261120  }
   0xe   : > { %512 = vperm.xlu0 %865, %v321_v0   ;;  %412 = vperm.xlu1 %861, %v321_v0   ;;  %v324_v9 = vld [vmem:[%s1046_s2 + $0x8] sm:$0xff]  ;;  %v334_v10 = vld [vmem:[%s1048_s4 + $0x18] sm:$0xff]  ;;  %v323_v13 = vld [vmem:[%s1046_s2] sm:$0xff]  ;;  %s831_s12 = sshll.u32 %s1057_s24, 3  ;;  %s832_s22 = sshll.u32 %s1057_s24, 4 }
   0xf   : > { %644 = vmatprep.mubr.bf16.mxu0 %v900_v4  ;;  %717 = vmatprep.mubr.bf16.mxu1 %v900_v4  ;;  %v332_v11 = vld [vmem:[%s1048_s4 + $0x8] sm:$0xff]  ;;  %v326_v12 = vld [vmem:[%s1046_s2 + $0x18] sm:$0xff]  ;;  %v333_v14 = vld [vmem:[%s1048_s4 + $0x10] sm:$0xff]  ;;  %v340_v24 = vshrl.u32 %v339_v22, 7  ;;  %s306_s15 = scalar_lea.vmem %s1044_s0, %s831_s12  ;;  %s316_s29 = scalar_lea.vmem %s1051_s7, %s832_s22 }
  0x10   : > { %v331_v15 = vld [vmem:[%s1048_s4] sm:$0xff] }
  0x11   : > { %v336_v16 = vld [vmem:[%s1050_s6] sm:$0xff]  ;;  %v341_v26 = vsub.s32 0, %v340_v24  ;;  %v345_v27 = vsub.s32 4, %v340_v24  ;;  %v387_v28 = vsub.s32 1, %v340_v24  ;;  %v391_v29 = vsub.s32 5, %v340_v24 }
  0x12   : > { %866 = vset.pattern.permute.xlu0 %v901_v5  ;;  %416 = vperm.xlu1 %861, %v322_v3   ;;  %v337_v31 = vld [vmem:[%s306_s15] sm:$0xff]  ;;  %v437_v37 = vsub.s32 2, %v340_v24  ;;  %v441_v38 = vsub.s32 6, %v340_v24  ;;  %v487_v40 = vsub.s32 3, %v340_v24  ;;  %v491_v41 = vsub.s32 7, %v340_v24 }
  0x13   : > { %462 = vperm.xlu0 %866, %v321_v0   ;;  %v342_v33 = vrot.slane %v337_v31, %v341_v26  ;;  %v346_v34 = vrot.slane %v337_v31, %v345_v27  ;;  %v388_v35 = vrot.slane %v337_v31, %v387_v28  ;;  %v392_v36 = vrot.slane %v337_v31, %v391_v29 }
  0x14   : > { %v438_v46 = vrot.slane %v337_v31, %v437_v37  ;;  %v442_v47 = vrot.slane %v337_v31, %v441_v38  ;;  %v488_v49 = vrot.slane %v337_v31, %v487_v40  ;;  %v492_v50 = vrot.slane %v337_v31, %v491_v41 }
  0x15   : > { %v352_v42 = vrot.slane %v342_v33, %v341_v26  ;;  %v356_v43 = vrot.slane %v346_v34, %v341_v26  ;;  %v398_v44 = vrot.slane %v388_v35, %v387_v28  ;;  %v402_v45 = vrot.slane %v392_v36, %v387_v28 }
  0x16   : > { %862 = vset.pattern.permute.xlu1 %v901_v5  ;;  %v448_v56 = vrot.slane %v438_v46, %v437_v37  ;;  %v452_v57 = vrot.slane %v442_v47, %v437_v37  ;;  %v498_v58 = vrot.slane %v488_v49, %v487_v40  ;;  %v502_v59 = vrot.slane %v492_v50, %v487_v40 }
  0x17   : > { %466 = vperm.xlu1 %862, %v322_v3   ;;  %458 = vperm.xlu0 %866, %v320_v6  }
  0x1b   : > { %863 = vset.pattern.permute.xlu1 %v900_v4  ;;  %869 = vset.pattern.permute.xlu0 %v900_v4 }
  0x1c   : > { %369 = vperm.xlu0 %869, %v321_v0   ;;  %359 = vperm.xlu1 %863, %v319_v7  }
  0x20   : > { %374 = vperm.xlu0 %869, %v322_v3   ;;  %864 = vset.pattern.permute.xlu1 %v899_v2 }
  0x21   : > { %404 = vperm.xlu1 %864, %v319_v7  }
  0x24   : > { %364 = vperm.xlu0 %869, %v320_v6  }
  0x25   : > { %408 = vperm.xlu1 %864, %v320_v6  }
  0x28   : > { %547 = vperm.xlu0 %869, %v325_v8  }
  0x29   : > { %867 = vset.pattern.permute.xlu1 %v898_v1 }
  0x2a   : > { %516 = vperm.xlu1 %867, %v322_v3  }
  0x2c   : > { %542 = vperm.xlu0 %869, %v324_v9  }
  0x2e   : > { %868 = vset.pattern.permute.xlu1 %v901_v5 }
  0x2f   : > { %454 = vperm.xlu1 %868, %v319_v7  }
  0x30   : > { %592 = vperm.xlu0 %869, %v334_v10  }
  0x33   : > { %870 = vset.pattern.permute.xlu1 %v898_v1 }
  0x34   : > { %582 = vperm.xlu0 %869, %v332_v11   ;;  %504 = vperm.xlu1 %870, %v319_v7  }
  0x38   : > { %508 = vperm.xlu1 %870, %v320_v6  }
  0x3c   : > { %871 = vset.pattern.permute.xlu1 %v900_v4 }
  0x3d   : > { %552 = vperm.xlu1 %871, %v326_v12  }
  0x41   : > { %537 = vperm.xlu1 %871, %v323_v13  }
  0x45   : > { %587 = vperm.xlu1 %871, %v333_v14  }
  0x49   : > { %577 = vperm.xlu1 %871, %v331_v15  }
  0x4d   : > { %679 = vperm.xlu1 %871, %v336_v16  }
  0x89   : > { %v413_v17 = vpop.permute.xlu1 %412  ;;  %v513_v18 = vpop.permute.xlu0 %512 }
  0x8a   : > { %v423_v54 = vmul.f32 %v413_v17, %v398_v44  ;;  %v424_v55 = vmul.f32 %v413_v17, %v402_v45  ;;  %v523_v9 = vmul.f32 %v513_v18, %v498_v58  ;;  %v524_v10 = vmul.f32 %v513_v18, %v502_v59 }
  0x8d   : > { %v417_v19 = vpop.permute.xlu1 %416 }
  0x8e   : > { %v463_v20 = vpop.permute.xlu0 %462  ;;  %v425_v13 = vmul.f32 %v417_v19, %v398_v44  ;;  %v426_v14 = vmul.f32 %v417_v19, %v402_v45 }
  0x8f   : > { %v473_v60 = vmul.f32 %v463_v20, %v448_v56  ;;  %v474_v61 = vmul.f32 %v463_v20, %v452_v57 }
  0x92   : > { %v1007_v21 = vpop.permute.xlu1 %466  ;;  %v459_v25 = vpop.permute.xlu0 %458 }
  0x93   : > { %v471_v20 = vmul.f32 %v459_v25, %v448_v56  ;;  %v472_v22 = vmul.f32 %v459_v25, %v452_v57  ;;  %v476_v33 = vmul.f32 %v1007_v21, %v452_v57 }
  0x97   : > { %v360_v23 = vpop.permute.xlu1 %359  ;;  %v370_v32 = vpop.permute.xlu0 %369 }
  0x98   : > { %v381_v52 = vmul.f32 %v370_v32, %v352_v42  ;;  %v382_v53 = vmul.f32 %v370_v32, %v356_v43  ;;  %v377_v24 = vmul.f32 %v360_v23, %v352_v42  ;;  %v378_v26 = vmul.f32 %v360_v23, %v356_v43 }
  0x99   : > { %v475_v32 = vmul.f32 %v1007_v21, %v448_v56 }
  0x9a   : > { %v431_v62 = vadd.f32 %v423_v54, %v381_v52  ;;  %v432_v63 = vadd.f32 %v424_v55, %v382_v53 }
  0x9b   : > { %v375_v48 = vpop.permute.xlu0 %374 }
  0x9c   : > { %v405_v30 = vpop.permute.xlu1 %404  ;;  %v383_v2 = vmul.f32 %v375_v48, %v352_v42  ;;  %v384_v3 = vmul.f32 %v375_v48, %v356_v43  ;;  %v481_v11 = vadd.f32 %v473_v60, %v431_v62  ;;  %v482_v12 = vadd.f32 %v474_v61, %v432_v63 }
  0x9d   : > { %v419_v15 = vmul.f32 %v405_v30, %v398_v44  ;;  %v420_v16 = vmul.f32 %v405_v30, %v402_v45 }
  0x9e   : > { %v433_v27 = vadd.f32 %v425_v13, %v383_v2  ;;  %v434_v28 = vadd.f32 %v426_v14, %v384_v3  ;;  %v531_v18 = vadd.f32 %v523_v9, %v481_v11  ;;  %v532_v34 = vadd.f32 %v524_v10, %v482_v12  ;;  %v872_v14 = vld [vmem:[%s1047_s3] sm:$0xff]  }
  0x9f   : > { %v365_v0 = vpop.permute.xlu0 %364  ;;  %v427_v35 = vadd.f32 %v419_v15, %v377_v24  ;;  %v428_v36 = vadd.f32 %v420_v16, %v378_v26  ;;  %v873_v15 = vld [vmem:[%s1047_s3 + $0x8] sm:$0xff]  }
  0xa0   : > { %v409_v39 = vpop.permute.xlu1 %408  ;;  %v379_v5 = vmul.f32 %v365_v0, %v352_v42  ;;  %v380_v6 = vmul.f32 %v365_v0, %v356_v43  ;;  %v483_v43 = vadd.f32 %v475_v32, %v433_v27 }
  0xa1   : > { %v421_v7 = vmul.f32 %v409_v39, %v398_v44  ;;  %v422_v8 = vmul.f32 %v409_v39, %v402_v45  ;;  %v484_v44 = vadd.f32 %v476_v33, %v434_v28 }
  0xa3   : > { %v429_v29 = vadd.f32 %v421_v7, %v379_v5  ;;  %v430_v31 = vadd.f32 %v422_v8, %v380_v6  ;;  %v548_v19 = vpop.permute.xlu0 %547 }
  0xa4   : > { %v559_v45 = vadd.f32 %v548_v19, %v531_v18  ;;  %v560_v46 = vadd.f32 %v548_v19, %v532_v34 }
  0xa5   : > { %v517_v51 = vpop.permute.xlu1 %516  ;;  %v479_v41 = vadd.f32 %v471_v20, %v429_v29  ;;  %v480_v42 = vadd.f32 %v472_v22, %v430_v31 }
  0xa6   : > { %v525_v37 = vmul.f32 %v517_v51, %v498_v58  ;;  %v526_v30 = vmul.f32 %v517_v51, %v502_v59  ;;  %v568_v63 = vmax.f32 %v560_v46, 0.0 }
  0xa7   : > { %v543_v60 = vpop.permute.xlu0 %542 }
  0xa8   : > { %v533_v50 = vadd.f32 %v525_v37, %v483_v43  ;;  %v534_v52 = vadd.f32 %v526_v30, %v484_v44 }
  0xaa   : > { %v455_v1 = vpop.permute.xlu1 %454 }
  0xab   : > { %v469_v39 = vmul.f32 %v455_v1, %v448_v56  ;;  %v470_v25 = vmul.f32 %v455_v1, %v452_v57  ;;  %v567_v57 = vmax.f32 %v559_v45, 0.0  ;;  %v593_v22 = vpop.permute.xlu0 %592 }
  0xad   : > { %v477_v53 = vadd.f32 %v469_v39, %v427_v35  ;;  %v478_v54 = vadd.f32 %v470_v25, %v428_v36 }
  0xaf   : > { %v505_v17 = vpop.permute.xlu1 %504  ;;  %v583_v29 = vpop.permute.xlu0 %582 }
  0xb0   : > { %v519_v47 = vmul.f32 %v505_v17, %v498_v58  ;;  %v520_v21 = vmul.f32 %v505_v17, %v502_v59 }
  0xb2   : > { %v527_v61 = vadd.f32 %v519_v47, %v477_v53  ;;  %v528_v62 = vadd.f32 %v520_v21, %v478_v54  ;;  %v335_v21 = vld [vmem:[%s1049_s5] sm:$0xf] }
  0xb3   : > { %v509_v38 = vpop.permute.xlu1 %508 }
  0xb4   : > { %v521_v40 = vmul.f32 %v509_v38, %v498_v58  ;;  %v522_v23 = vmul.f32 %v509_v38, %v502_v59 }
  0xb6   : > { %v529_v48 = vadd.f32 %v521_v40, %v479_v41  ;;  %v530_v49 = vadd.f32 %v522_v23, %v480_v42 }
  0xb8   : > { %v553_v51 = vpop.permute.xlu1 %552  ;;  %v557_v0 = vadd.f32 %v543_v60, %v529_v48  ;;  %v558_v1 = vadd.f32 %v543_v60, %v530_v49 }
  0xb9   : > { %v561_v55 = vadd.f32 %v553_v51, %v533_v50  ;;  %v562_v56 = vadd.f32 %v553_v51, %v534_v52 }
  0xba   : > { %v566_v10 = vmax.f32 %v558_v1, 0.0  ;;  %v565_v11 = vmax.f32 %v557_v0, 0.0 }
  0xbb   : > { %v569_v2 = vmax.f32 %v561_v55, 0.0  ;;  %v570_v3 = vmax.f32 %v562_v56, 0.0 }
  0xbc   : > { %v538_v58 = vpop.permute.xlu1 %537 }
  0xbd   : > { %v555_v59 = vadd.f32 %v538_v58, %v527_v61  ;;  %v556_v5 = vadd.f32 %v538_v58, %v528_v62  ;;  %v574_v6 = vpack.c.bf16 %v570_v3, %v568_v63  ;;  %v573_v7 = vpack.c.bf16 %v569_v2, %v567_v57 }
  0xbf   : > { %v563_v8 = vmax.f32 %v555_v59, 0.0  ;;  %v564_v9 = vmax.f32 %v556_v5, 0.0  ;;  %624 = vmatprep.subr.bf16.mxu0 %v574_v6 }
  0xc0   : > { %625 = vmatpush1.bf16.msra.mxu0 %v573_v7  ;;  %v588_v26 = vpop.permute.xlu1 %587 }
  0xc1   : > { %v572_v12 = vpack.c.bf16 %v566_v10, %v564_v9  ;;  %v571_v13 = vpack.c.bf16 %v565_v11, %v563_v8 }
  0xc3   : > { %626 = vmatprep.subr.bf16.mxu0 %v572_v12 }
  0xc4   : > { %627 = vmatpush1.bf16.msra.mxu0 %v571_v13 }
  0xc7   : > { %826 = vmatmul.mubr.msk.bf16.vlgmr.msra.gmra.mxu0 %vm605_vm0, %v872_v14 }
  0xc8   : > { %654 = vmatprep.mubr.bf16.mxu0 %v900_v4  ;;  %v578_v4 = vpop.permute.xlu1 %577 }
  0xcc   : > { %v680_v48 = vpop.permute.xlu1 %679 }
  0xcf   : > { %827 = vmatmul.mubr.msk.bf16.gmra.mxu0 %vm605_vm0, %v873_v15 }
 0x187   : > { %v646_v16 = vpop.f32.mrf.mxu0 }
 0x188   : > { %v647_v40 = vadd.f32 %v646_v16, %v578_v4 }
 0x189   : > { %v648_v17 = vpop.f32.mrf.mxu0 }
 0x18a   : > { %v649_v36 = vadd.f32 %v648_v17, %v578_v4  ;;  %v665_v46 = vmax.f32 %v647_v40, 0.0 }
 0x18b   : > { %v650_v20 = vpop.f32.mrf.mxu0 }
 0x18c   : > { %v651_v37 = vadd.f32 %v650_v20, %v583_v29  ;;  %v666_v41 = vmax.f32 %v649_v36, 0.0 }
 0x18d   : > { %v652_v24 = vpop.f32.mrf.mxu0 }
 0x18e   : > { %v653_v32 = vadd.f32 %v652_v24, %v583_v29  ;;  %v667_v43 = vmax.f32 %v651_v37, 0.0 }
 0x18f   : > { %v656_v27 = vpop.f32.mrf.mxu0 }
 0x190   : > { %v657_v34 = vadd.f32 %v656_v27, %v588_v26  ;;  %v668_v38 = vmax.f32 %v653_v32, 0.0  ;;  %v673_v47 = vpack.c.bf16 %v667_v43, %v665_v46 }
 0x191   : > { %v658_v28 = vpop.f32.mrf.mxu0 }
 0x192   : > { %v659_v33 = vadd.f32 %v658_v28, %v588_v26  ;;  %v669_v23 = vmax.f32 %v657_v34, 0.0  ;;  %v674_v45 = vpack.c.bf16 %v668_v38, %v666_v41 }
 0x193   : > { %v660_v31 = vpop.f32.mrf.mxu0 }
 0x194   : > { %v661_v18 = vadd.f32 %v660_v31, %v593_v22  ;;  %v670_v39 = vmax.f32 %v659_v33, 0.0 }
 0x195   : > { %v662_v35 = vpop.f32.mrf.mxu0 }
 0x196   : > { %v663_v19 = vadd.f32 %v662_v35, %v593_v22  ;;  %v671_v30 = vmax.f32 %v661_v18, 0.0 }
 0x198   : > { %v672_v25 = vmax.f32 %v663_v19, 0.0  ;;  %v675_v44 = vpack.c.bf16 %v671_v30, %v669_v23 }
 0x19a   : > { %v676_v42 = vpack.c.bf16 %v672_v25, %v670_v39 }
 0x19c   : > { %697 = vmatprep.subr.bf16.mxu1 %v676_v42 }
 0x19d   : > { %698 = vmatpush1.bf16.msra.mxu1 %v675_v44 }
 0x19e   : > { %699 = vmatprep.subr.bf16.mxu1 %v674_v45 }
 0x1a1   : > { %700 = vmatpush1.bf16.msra.mxu1 %v673_v47 }
 0x1a4   : > { %828 = vmatmul.mubr.msk.bf16.vlgmr.msra.gmra.mxu1 %vm605_vm0, %v335_v21 }
 0x264   : > { %v719_v49 = vpop.f32.mrf.mxu1 }
 0x265   : > { %v720_v50 = vadd.f32 %v719_v49, %v680_v48 }
 0x266   : > { %v721_v52 = vpop.f32.mrf.mxu1 }
 0x267   : > { %726 = vst [vmem:[%s316_s29] sm:$0xff] %v720_v50  ;;  %v722_v53 = vadd.f32 %v721_v52, %v680_v48 }
 0x268   : > { %v723_v54 = vpop.f32.mrf.mxu1 }
 0x269   : > { %727 = vst [vmem:[%s316_s29 + $0x8] sm:$0xff] %v722_v53 }
 0x26a   : > { %v724_v51 = vpop.f32.mrf.mxu1 }
 0x26b PF: > { %s17_s26 = sadd.s32 1, %s896_s26   ;;  %s1052_s24 = smov %s892_s25 }
 0x26c   : > { %p14_p5 = scmp.ge.s32.totalorder %s17_s26, 4   ;;  %s1053_s25 = smov %s1055_s27 }
 0x26e   :  { %16 = sbr.rel (!%p14_p5) target bundleno = 2 (0x2), region = 78 }

</bundles_post_ra>
